<compile_context>
chip_gen: v7x
topology: tpu7x:2x2x1
jax: 0.10.0
libtpu: 0.0.40
codegen_flags: <defaults>
</compile_context>

<pallas_src>
import jax
import jax.numpy as jnp
from jax.experimental import pallas as pl
from jax.experimental.pallas import tpu as pltpu


def attn_net_kernel(x_ref, w1_ref, b1_ref, w2_ref, b2_ref, out_ref):
    # Two fused MXU matmuls + VPU/EUP tanh, all in VMEM.
    x = x_ref[...]                                            # (TILE_N, L)  mm dtype
    h = jnp.dot(x, w1_ref[...], preferred_element_type=jnp.float32)
    h = jnp.tanh(h + b1_ref[...])                             # (TILE_N, D)  f32
    h = h.astype(w2_ref.dtype)                                # back to mm dtype
    a = jnp.dot(h, w2_ref[...], preferred_element_type=jnp.float32)
    out_ref[...] = (a + b2_ref[...]).astype(out_ref.dtype)    # (TILE_N, NC_PAD)


def attn_net_forward(x, w1, b1, w2, b2, *, tile_n=128, use_bf16=True):
    """Returns (attention_scores, x) mimicking Attn_Net.forward."""
    N, L = x.shape
    D = w1.shape[1]
    n_classes = w2.shape[1]
    out_dtype = x.dtype

    # --- lane-dense class dim: pad n_classes up to a multiple of 128 lanes ---
    nc_pad = max(128, ((n_classes + 127) // 128) * 128)
    # --- pad batch to a multiple of the row tile ---
    n_tiles = pl.cdiv(N, tile_n)
    n_pad = n_tiles * tile_n

    mm_dtype = jnp.bfloat16 if use_bf16 else x.dtype

    x_p = x if n_pad == N else jnp.pad(x, ((0, n_pad - N), (0, 0)))
    x_p = x_p.astype(mm_dtype)
    w1_c = w1.astype(mm_dtype)
    w2_p = jnp.pad(w2, ((0, 0), (0, nc_pad - n_classes))).astype(mm_dtype)
    b1_c = b1.reshape(1, D).astype(jnp.float32)
    b2_p = jnp.pad(b2.reshape(1, n_classes).astype(jnp.float32),
                   ((0, 0), (0, nc_pad - n_classes)))

    bytes_in = (x_p.size * x_p.dtype.itemsize
                + w1_c.size * w1_c.dtype.itemsize
                + b1_c.size * 4
                + w2_p.size * w2_p.dtype.itemsize
                + b2_p.size * 4)
    bytes_out = n_pad * nc_pad * jnp.dtype(out_dtype).itemsize
    cost = pl.CostEstimate(
        flops=2 * n_pad * L * D + 2 * n_pad * D * nc_pad,
        transcendentals=n_pad * D,                 # tanh
        bytes_accessed=bytes_in + bytes_out,
    )

    a_pad = pl.pallas_call(
        attn_net_kernel,
        out_shape=jax.ShapeDtypeStruct((n_pad, nc_pad), out_dtype),
        grid=(n_tiles,),
        in_specs=[
            pl.BlockSpec((tile_n, L), lambda i: (i, 0)),     # x: tiled over rows
            pl.BlockSpec((L, D), lambda i: (0, 0)),          # w1: VMEM-resident
            pl.BlockSpec((1, D), lambda i: (0, 0)),          # b1: VMEM-resident
            pl.BlockSpec((D, nc_pad), lambda i: (0, 0)),     # w2: VMEM-resident
            pl.BlockSpec((1, nc_pad), lambda i: (0, 0)),     # b2: VMEM-resident
        ],
        out_specs=pl.BlockSpec((tile_n, nc_pad), lambda i: (i, 0)),
        compiler_params=pltpu.CompilerParams(
            dimension_semantics=("parallel",),               # megacore-shardable rows
            vmem_limit_bytes=32 * 1024 * 1024,               # above v5e 16 MiB default
        ),
        cost_estimate=cost,
    )(x_p, w1_c, b1_c, w2_p, b2_p)

    # Slice padding back off; attention scores + passthrough input.
    return a_pad[:N, :n_classes], x


if __name__ == "__main__":
    # Small shapes consistent with Attn_Net(L, D, n_classes); N deliberately
    # not a multiple of the row tile to exercise the padding path.
    N, L, D, n_classes = 200, 128, 64, 1

    key = jax.random.PRNGKey(0)
    k_x, k_w1, k_b1, k_w2, k_b2 = jax.random.split(key, 5)

    # PyTorch-style uniform(-1/sqrt(in), 1/sqrt(in)) init.
    bound1 = 1.0 / (L ** 0.5)
    bound2 = 1.0 / (D ** 0.5)
    x = jax.random.normal(k_x, (N, L), dtype=jnp.float32)
    w1 = jax.random.uniform(k_w1, (L, D), dtype=jnp.float32, minval=-bound1, maxval=bound1)
    b1 = jax.random.uniform(k_b1, (1, D), dtype=jnp.float32, minval=-bound1, maxval=bound1)
    w2 = jax.random.uniform(k_w2, (D, n_classes), dtype=jnp.float32, minval=-bound2, maxval=bound2)
    b2 = jax.random.uniform(k_b2, (1, n_classes), dtype=jnp.float32, minval=-bound2, maxval=bound2)

    # --- f32 path: exact-ish check against the pure f32 reference ---
    a_f32, x_out = attn_net_forward(x, w1, b1, w2, b2, use_bf16=False)
    jax.block_until_ready(a_f32)
    jax.block_until_ready(x_out)
    a_ref_f32 = jnp.tanh(x @ w1 + b1) @ w2 + b2
    assert a_f32.shape == (N, n_classes)
    assert x_out.shape == (N, L)
    assert jnp.allclose(a_f32, a_ref_f32, atol=1e-4, rtol=1e-4)
    assert jnp.array_equal(x_out, x)

    # --- bf16-MXU path: check against a matched-precision JAX reference ---
    a_bf16, _ = attn_net_forward(x, w1, b1, w2, b2, use_bf16=True)
    jax.block_until_ready(a_bf16)
    xb = x.astype(jnp.bfloat16)
    w1b = w1.astype(jnp.bfloat16)
    w2b = w2.astype(jnp.bfloat16)
    h_ref = jnp.tanh(jnp.dot(xb, w1b, preferred_element_type=jnp.float32) + b1)
    a_ref_bf16 = jnp.dot(h_ref.astype(jnp.bfloat16), w2b,
                         preferred_element_type=jnp.float32) + b2
    assert jnp.allclose(a_bf16, a_ref_bf16, atol=1e-3, rtol=1e-3)
    # Sanity vs. full-f32 reference (bf16 input rounding dominates).
    assert jnp.allclose(a_bf16, a_ref_f32, atol=5e-2, rtol=5e-2)

    print("KERNEL_OK")
</pallas_src>

<mosaic_0001>
module attributes {stable_mosaic.version = 11 : i64} {
  func.func @attn_net_kernel(%arg0: i32, %arg1: memref<128x128xf32, #tpu.memory_space<vmem>>, %arg2: memref<128x64xf32, #tpu.memory_space<vmem>>, %arg3: memref<1x64xf32, #tpu.memory_space<vmem>>, %arg4: memref<64x128xf32, #tpu.memory_space<vmem>>, %arg5: memref<1x128xf32, #tpu.memory_space<vmem>>, %arg6: memref<128x128xf32, #tpu.memory_space<vmem>>) attributes {dimension_semantics = [#tpu.dimension_semantics<parallel>], iteration_bounds = array<i64: 2>, scalar_prefetch = 0 : i64, scratch_operands = 0 : i64, tpu.core_type = #tpu.core_type<tc>, window_params = [{transform_indices = @transform_0, window_bounds = array<i64: 128, 128>}, {pipeline_mode = #tpu.pipeline_mode<synchronous>, transform_indices = @transform_1, window_bounds = array<i64: 128, 64>}, {pipeline_mode = #tpu.pipeline_mode<synchronous>, transform_indices = @transform_2, window_bounds = array<i64: 1, 64>}, {pipeline_mode = #tpu.pipeline_mode<synchronous>, transform_indices = @transform_3, window_bounds = array<i64: 64, 128>}, {pipeline_mode = #tpu.pipeline_mode<synchronous>, transform_indices = @transform_4, window_bounds = array<i64: 1, 128>}, {transform_indices = @transform_5, window_bounds = array<i64: 128, 128>}]} {
    %c0 = arith.constant 0 : index
    %c0_0 = arith.constant 0 : index
    %0 = vector.load %arg1[%c0, %c0_0] : memref<128x128xf32, #tpu.memory_space<vmem>>, vector<128x128xf32>
    %c0_1 = arith.constant 0 : index
    %c0_2 = arith.constant 0 : index
    %1 = vector.load %arg2[%c0_1, %c0_2] : memref<128x64xf32, #tpu.memory_space<vmem>>, vector<128x64xf32>
    %cst = arith.constant dense<0.000000e+00> : vector<128x64xf32>
    %2 = tpu.matmul %0, %1, %cst {dimension_numbers = #tpu.dot_dimension_numbers<[1], [0], [0], [1], [0, 0, 1, 1], [], []>} : vector<128x128xf32>, vector<128x64xf32>, vector<128x64xf32> -> vector<128x64xf32>
    %c0_3 = arith.constant 0 : index
    %c0_4 = arith.constant 0 : index
    %3 = vector.load %arg3[%c0_3, %c0_4] : memref<1x64xf32, #tpu.memory_space<vmem>>, vector<1x64xf32>
    %4 = vector.broadcast %3 : vector<1x64xf32> to vector<128x64xf32>
    %5 = arith.addf %2, %4 : vector<128x64xf32>
    %6 = math.tanh %5 : vector<128x64xf32>
    %c0_5 = arith.constant 0 : index
    %c0_6 = arith.constant 0 : index
    %7 = vector.load %arg4[%c0_5, %c0_6] : memref<64x128xf32, #tpu.memory_space<vmem>>, vector<64x128xf32>
    %cst_7 = arith.constant dense<0.000000e+00> : vector<128x128xf32>
    %8 = tpu.matmul %6, %7, %cst_7 {dimension_numbers = #tpu.dot_dimension_numbers<[1], [0], [0], [1], [0, 0, 1, 1], [], []>} : vector<128x64xf32>, vector<64x128xf32>, vector<128x128xf32> -> vector<128x128xf32>
    %c0_8 = arith.constant 0 : index
    %c0_9 = arith.constant 0 : index
    %9 = vector.load %arg5[%c0_8, %c0_9] : memref<1x128xf32, #tpu.memory_space<vmem>>, vector<1x128xf32>
    %10 = vector.broadcast %9 : vector<1x128xf32> to vector<128x128xf32>
    %11 = arith.addf %8, %10 : vector<128x128xf32>
    %c0_10 = arith.constant 0 : index
    %c0_11 = arith.constant 0 : index
    %12 = vector.load %arg6[%c0_10, %c0_11] : memref<128x128xf32, #tpu.memory_space<vmem>>, vector<128x128xf32>
    tpu.vector_store %arg6[%c0_10, %c0_11], %11 {strides = array<i32>} : memref<128x128xf32, #tpu.memory_space<vmem>>, vector<128x128xf32>,
    return
  }
  func.func @transform_0(%arg0: i32) -> (i32, i32) {
    %c0_i32 = arith.constant 0 : i32
    %c0_i32_0 = arith.constant 0 : i32
    return %arg0, %c0_i32 : i32, i32
  }
  func.func @transform_1(%arg0: i32) -> (i32, i32) {
    %c0_i32 = arith.constant 0 : i32
    %c0_i32_0 = arith.constant 0 : i32
    %c0_i32_1 = arith.constant 0 : i32
    return %c0_i32, %c0_i32_0 : i32, i32
  }
  func.func @transform_2(%arg0: i32) -> (i32, i32) {
    %c0_i32 = arith.constant 0 : i32
    %c0_i32_0 = arith.constant 0 : i32
    %c0_i32_1 = arith.constant 0 : i32
    return %c0_i32, %c0_i32_0 : i32, i32
  }
  func.func @transform_3(%arg0: i32) -> (i32, i32) {
    %c0_i32 = arith.constant 0 : i32
    %c0_i32_0 = arith.constant 0 : i32
    %c0_i32_1 = arith.constant 0 : i32
    return %c0_i32, %c0_i32_0 : i32, i32
  }
  func.func @transform_4(%arg0: i32) -> (i32, i32) {
    %c0_i32 = arith.constant 0 : i32
    %c0_i32_0 = arith.constant 0 : i32
    %c0_i32_1 = arith.constant 0 : i32
    return %c0_i32, %c0_i32_0 : i32, i32
  }
  func.func @transform_5(%arg0: i32) -> (i32, i32) {
    %c0_i32 = arith.constant 0 : i32
    %c0_i32_0 = arith.constant 0 : i32
    return %arg0, %c0_i32 : i32, i32
  }
}

</mosaic_0001>

<bundles_post_ra>
// kernel: tpu_custom_call.1
= control target key start
LH: loop header
LB: loop body
LE: loop exit
PB: predicated region body
PF: predicated region fallthrough
CT: control target
= control target key end

     0   :  { %10 = vsyncpa [#allocation3], 0  ;;  %s1522_s0 = inlined_call_operand.hbm [shape: f32[256,128], index: 0, kind: input, shape index: {}]   ;;  %s1523_s1 = inlined_call_operand.vmem [shape: f32[128,64], index: 1, kind: input, shape index: {}]   ;;  %s1524_s2 = inlined_call_operand.vmem [shape: f32[1,64], index: 2, kind: input, shape index: {}]   ;;  %s1525_s3 = inlined_call_operand.vmem [shape: f32[64,128], index: 3, kind: input, shape index: {}]   ;;  %s1526_s4 = inlined_call_operand.vmem [shape: f32[1,128], index: 4, kind: input, shape index: {}]   ;;  %s1527_s5 = inlined_call_operand.hbm [shape: f32[256,128], index: 5, kind: output, shape index: {}]  }
   0x1   :  { %12 = vsyncpa [#allocation3 + $0x1], 0 }
   0x2   :  { %13 = vsyncpa [#allocation4], 0 }
   0x3   :  { %15 = vsyncpa [#allocation4 + $0x1], 0  ;;  %s1207_s18 = smov 0   ;;  %s1209_s19 = smov 0  }
   0x4   :  { %s1211_s20 = smov 0   ;;  %s1213_s21 = smov 0  }
   0x5 LB: > { %s1228_s22 = sadd.s32 4294967295, %s1169_s21   ;;  %s757_s23 = sadd.s32 4294967294, %s1169_s21   ;;  %s1169_s21 = sphi %s1213_s21, %s1540_s21   ;;  %s1165_s20 = sphi %s1211_s20, %s1539_s20   ;;  %s1161_s19 = sphi %s1209_s19, %s1538_s19   ;;  %s1157_s18 = sphi %s1207_s18, %s1537_s18  }
   0x6   : > { %s1232_s24 = sadd.s32 1, %s1169_s21   ;;  %s28_s25 = sadd.s32 1, %s1165_s20 }
   0x7   : > { %s25_s26 = ssub.s32 %s1169_s21, %s1232_s24  ;;  %p35_p0 = scmp.ne.s32.totalorder %s1165_s20, %s1161_s19 }
   0x8   : > { %p26_p1 = scmp.eq.s32.totalorder %s25_s26, 0  ;;  %p36_p2 = scmp.eq.s32.totalorder %s1169_s21, 0 }
   0x9   : > { %p41_p3 = scmp.ne.s32.totalorder %s1161_s19, %s1157_s18  ;;  %p42_p4 = scmp.eq.s32.totalorder %s1228_s22, 0 }
   0xa   : > { %s1244_s27 = scalar_select %p26_p1, %s1165_s20, %s28_s25  }
   0xb   : > { %p1246_p5 = por %p36_p2, %p35_p0  ;;  %p1250_p6 = por %p42_p4, %p41_p3 }
   0xc   : > { %p149_p7 = scmp.eq.s32.totalorder %s1228_s22, 1  ;;  %p155_p8 = scmp.eq.s32.totalorder %s757_s23, 1 }
   0xd   : > { %p1003_p10 = scmp.lt.s32.totalorder %s1169_s21, 2  ;;  %s187_s7 = sand.u32 1, %s1165_s20  }
   0xe   : > { %p1257_p11 = por %p149_p7, %p35_p0  ;;  %p1261_p12 = por %p155_p8, %p41_p3 }
   0xf   : > { %s789_s8 = sshll.u32 %s1169_s21, 11  ;;  %s760_s9 = sshll.u32 %s187_s7, 7 }
  0x10   : > { %s1531_s30 = scalar_select %p1257_p11, 1, 0 }
  0x11   : > { %s1532_s6 = scalar_select %p1261_p12, 1, 0 }
  0x12   : > { %s1270_s12 = scalar_lea.hbm %s1522_s0, %s789_s8  ;;  %s191_s13 = scalar_lea.vmem [#allocation2], %s760_s9 }
  0x13   : > { %s198_s14 = sshll.u32 %s191_s13, 4  ;;  %p1274_p13 = pnand %p1003_p10, %p1246_p5  ;;  %s1278_s14 = int_to_ptr.vmem [resolvable:$true] %s198_s14 }
  0x14   : > { %s1280_s16 = scalar_lea.sflag [#allocation3], %s187_s7  ;;  %s1073_s17 = scalar_lea.hbm %s1270_s12, 2048 }
  0x15   : > { %p1074_p0 = scmp.ne.s32.totalorder %s1270_s12, %s1073_s17  ;;  %p1075_p1 = pneg %p1274_p13 }
  0x16   : > { %s1078_s26 = scalar_lea.hbm %s1522_s0, 4096  ;;  %p1079_p4 = scmp.lt.u32.totalorder %s1270_s12, %s1522_s0 }
  0x17   : > { %p1076_p2 = pnand %p1075_p1, %p1074_p0  ;;  %p1080_p5 = scmp.lt.u32.totalorder %s1078_s26, %s1073_s17 }
  0x18   : > { %p1082_p8 = scmp.lt.u32.totalorder %s1073_s17, %s1270_s12 }
  0x19   : > { %p1077_p3 = pneg %p1076_p2  ;;  %p1081_p7 = por %p1080_p5, %p1079_p4 }
  0x1b   : > { %p1083_p10 = por %p1082_p8, %p1081_p7 }
  0x1d   : > { %p1084_p9 = pnand %p1083_p10, %p1077_p3 }
  0x1f   : > { %1087 = shalt.err (!%p1084_p9)
}
  0x20   : > { %s1088_s7 = scalar_lea.vmem %s1278_s14, 2048  ;;  %s1171_s9 = smov [#allocation2]  }
  0x21   : > { %p1089_p0 = scmp.ne.s32.totalorder %s1278_s14, %s1088_s7  ;;  %s1093_s10 = sshll.u32 %s1171_s9, 4  ;;  %s1094_s10 = int_to_ptr.vmem [resolvable:$false] %s1093_s10 }
  0x22   : > { %s1095_s11 = scalar_lea.vmem %s1094_s10, 4096  ;;  %p1096_p11 = scmp.lt.s32.totalorder %s1278_s14, %s1094_s10 }
  0x23   : > { %p1091_p2 = pnand %p1089_p0, %p1075_p1  ;;  %p1097_p4 = scmp.lt.s32.totalorder %s1095_s11, %s1088_s7 }
  0x25   : > { %p1092_p12 = pneg %p1091_p2  ;;  %p1098_p5 = por %p1097_p4, %p1096_p11 }
  0x27   : > { %p1099_p7 = pnand %p1098_p5, %p1092_p12 }
  0x29   : > { %1102 = shalt.err (!%p1099_p7)
}
  0x2a   : > { %s1172_s13 = smov 128   ;;  %s1173_s17 = smov 8  }
  0x2b   : > { %998 = dma.hbm_to_vmem [thread:$0]  (!%p1274_p13), %s1270_s12, 2048, %s1278_s14, %s1280_s16, %s1172_s13, %s1172_s13, %s1173_s17  }
  0x2c   : > { %p763_p9 = scmp.ge.s32.totalorder %s1169_s21, 1  ;;  %p206_p1 = scmp.lt.s32.totalorder %s1169_s21, 3 }
  0x2e   : > { %p207_p3 = pnand %p763_p9, %p206_p1 }
  0x2f   : > { %s1311_s23 = sand.u32 (!%p207_p3), 1, %s1161_s19  }
  0x30   : > { %210 = sbr.rel (%p207_p3) target bundleno = 576 (0x240), region = 40  ;;  %s764_s25 = sshll.u32 (!%p207_p3), %s1311_s23, 7 }
  0x31   : > { %s213_s26 = scalar_lea.sflag (!%p207_p3), [#allocation3], %s1311_s23  ;;  %s1317_s28 = scalar_lea.vmem (!%p207_p3), [#allocation2], %s764_s25 }
  0x37   : > { %1148 = dma.done.wait (%p1250_p6), %s213_s26, 2048  }
  0x38   : > { %1150 = vsyncadd (%p1250_p6), %s213_s26, 4294965248  ;;  %v261_v0 = vld [vmem:[%s1523_s1] sm:$0xff]  ;;  %v262_v1 = vld [vmem:[%s1523_s1 + $0x8] sm:$0xff]  ;;  %vm460_vm0 = vcmask 523264   ;;  %s1453_s26 = scalar_lea.vmem [#allocation5], %s764_s25  ;;  %s790_s25 = sshll.u32 %s1228_s22, 11 }
  0x39   : > { %v263_v2 = vld [vmem:[%s1523_s1 + $0x10] sm:$0xff]  ;;  %v943_v3 = vpack.c.bf16 %v262_v1, %v261_v0  ;;  %v264_v4 = vld [vmem:[%s1523_s1 + $0x18] sm:$0xff]  ;;  %v265_v6 = vld [vmem:[%s1523_s1 + $0x20] sm:$0xff]  ;;  %s684_s12 = sshll.u32 %s1453_s26, 4  ;;  %s1474_s15 = scalar_lea.hbm %s1527_s5, %s790_s25  ;;  %s1476_s12 = int_to_ptr.vmem [resolvable:$true] %s684_s12 }
  0x3a   : > { %v947_v5 = vpack.c.bf16 %v264_v4, %v263_v2  ;;  %v266_v7 = vld [vmem:[%s1523_s1 + $0x28] sm:$0xff]  ;;  %v245_v9 = vld [vmem:[%s1317_s28] sm:$0xff]  ;;  %v267_v10 = vld [vmem:[%s1523_s1 + $0x30] sm:$0xff]  ;;  %s671_s22 = scalar_lea.sflag [#allocation4], %s1311_s23  ;;  %s1103_s16 = scalar_lea.vmem %s1476_s12, 2048 }
  0x3b   : > { %944 = vmatprep.subr.bf16.mxu0 %v943_v3  ;;  %v951_v8 = vpack.c.bf16 %v266_v7, %v265_v6  ;;  %v268_v11 = vld [vmem:[%s1523_s1 + $0x38] sm:$0xff]  ;;  %879 = vmatprep.mubr.f32.mxu0 %v245_v9  ;;  %v269_v13 = vld [vmem:[%s1523_s1 + $0x40] sm:$0xff]  ;;  %v270_v14 = vld [vmem:[%s1523_s1 + $0x48] sm:$0xff]  ;;  %p1104_p6 = scmp.ne.s32.totalorder %s1476_s12, %s1103_s16  ;;  %p1534_p11 = scmp.ne.s32.totalorder %s1531_s30, 0 }
  0x3c   : > { %946 = vmatpush3.bf16.msra.mxu0 %v943_v3  ;;  %v955_v12 = vpack.c.bf16 %v268_v11, %v267_v10  ;;  %v959_v15 = vpack.c.bf16 %v270_v14, %v269_v13  ;;  %v271_v16 = vld [vmem:[%s1523_s1 + $0x50] sm:$0xff]  ;;  %v272_v17 = vld [vmem:[%s1523_s1 + $0x58] sm:$0xff]  ;;  %v273_v19 = vld [vmem:[%s1523_s1 + $0x60] sm:$0xff]  ;;  %s1174_s8 = smov [#allocation5]  }
  0x3d   : > { %948 = vmatprep.subr.bf16.mxu0 %v947_v5  ;;  %v963_v18 = vpack.c.bf16 %v272_v17, %v271_v16  ;;  %v274_v20 = vld [vmem:[%s1523_s1 + $0x68] sm:$0xff]  ;;  %v275_v22 = vld [vmem:[%s1523_s1 + $0x70] sm:$0xff]  ;;  %v276_v23 = vld [vmem:[%s1523_s1 + $0x78] sm:$0xff]  ;;  %p1105_p12 = pnand %p1104_p6, %p1534_p11  ;;  %s1107_s7 = sshll.u32 %s1174_s8, 4  ;;  %s1108_s7 = int_to_ptr.vmem [resolvable:$false] %s1107_s7 }
  0x3e   : > { %v967_v21 = vpack.c.bf16 %v274_v20, %v273_v19  ;;  %v971_v24 = vpack.c.bf16 %v276_v23, %v275_v22  ;;  %v246_v25 = vld [vmem:[%s1317_s28 + $0x8] sm:$0xff]  ;;  %v247_v26 = vld [vmem:[%s1317_s28 + $0x10] sm:$0xff]  ;;  %v248_v27 = vld [vmem:[%s1317_s28 + $0x18] sm:$0xff]  ;;  %s1109_s9 = scalar_lea.vmem %s1108_s7, 4096  ;;  %p1110_p8 = scmp.lt.s32.totalorder %s1476_s12, %s1108_s7 }
  0x3f   : > { %v249_v28 = vld [vmem:[%s1317_s28 + $0x20] sm:$0xff]  ;;  %v250_v29 = vld [vmem:[%s1317_s28 + $0x28] sm:$0xff]  ;;  %v251_v30 = vld [vmem:[%s1317_s28 + $0x30] sm:$0xff]  ;;  %p1106_p13 = pneg %p1105_p12  ;;  %p1111_p10 = scmp.lt.s32.totalorder %s1109_s9, %s1103_s16 }
  0x40   : > { %950 = vmatpush3.bf16.msra.mxu0 %v947_v5  ;;  %v252_v31 = vld [vmem:[%s1317_s28 + $0x38] sm:$0xff]  ;;  %v253_v32 = vld [vmem:[%s1317_s28 + $0x40] sm:$0xff]  ;;  %v254_v33 = vld [vmem:[%s1317_s28 + $0x48] sm:$0xff] }
  0x41   : > { %952 = vmatprep.subr.bf16.mxu0 %v951_v8  ;;  %v255_v34 = vld [vmem:[%s1317_s28 + $0x50] sm:$0xff]  ;;  %v256_v35 = vld [vmem:[%s1317_s28 + $0x58] sm:$0xff]  ;;  %v257_v36 = vld [vmem:[%s1317_s28 + $0x60] sm:$0xff]  ;;  %p1112_p0 = por %p1111_p10, %p1110_p8 }
  0x42   : > { %v258_v37 = vld [vmem:[%s1317_s28 + $0x68] sm:$0xff]  ;;  %v259_v38 = vld [vmem:[%s1317_s28 + $0x70] sm:$0xff]  ;;  %v260_v39 = vld [vmem:[%s1317_s28 + $0x78] sm:$0xff] }
  0x43   : > { %v445_v40 = vld [vmem:[%s1525_s3] sm:$0xff]  ;;  %v446_v41 = vld [vmem:[%s1525_s3 + $0x8] sm:$0xff]  ;;  %v447_v43 = vld [vmem:[%s1525_s3 + $0x10] sm:$0xff]  ;;  %p1113_p2 = pnand %p1112_p0, %p1106_p13 }
  0x44   : > { %954 = vmatpush3.bf16.msra.mxu0 %v951_v8  ;;  %v975_v42 = vpack.c.bf16 %v446_v41, %v445_v40  ;;  %v448_v44 = vld [vmem:[%s1525_s3 + $0x18] sm:$0xff]  ;;  %v449_v46 = vld [vmem:[%s1525_s3 + $0x20] sm:$0xff]  ;;  %v450_v47 = vld [vmem:[%s1525_s3 + $0x28] sm:$0xff] }
  0x45   : > { %956 = vmatprep.subr.bf16.mxu0 %v955_v12  ;;  %v979_v45 = vpack.c.bf16 %v448_v44, %v447_v43  ;;  %v983_v48 = vpack.c.bf16 %v450_v47, %v449_v46  ;;  %v451_v49 = vld [vmem:[%s1525_s3 + $0x30] sm:$0xff]  ;;  %v452_v50 = vld [vmem:[%s1525_s3 + $0x38] sm:$0xff]  ;;  %v1414_v52 = vld [vmem:[%s1524_s2] ss:$0 sm:$0xff] }
  0x46   : > { %976 = vmatprep.subr.bf16.mxu1 %v975_v42  ;;  %v987_v51 = vpack.c.bf16 %v452_v50, %v451_v49 }
  0x47   : > { %978 = vmatpush3.bf16.msra.mxu1 %v975_v42 }
  0x48   : > { %958 = vmatpush3.bf16.msra.mxu0 %v955_v12  ;;  %980 = vmatprep.subr.bf16.mxu1 %v979_v45 }
  0x49   : > { %960 = vmatprep.subr.bf16.mxu0 %v959_v15 }
  0x4b   : > { %982 = vmatpush3.bf16.msra.mxu1 %v979_v45 }
  0x4c   : > { %962 = vmatpush3.bf16.msra.mxu0 %v959_v15  ;;  %984 = vmatprep.subr.bf16.mxu1 %v983_v48 }
  0x4d   : > { %964 = vmatprep.subr.bf16.mxu0 %v963_v18 }
  0x4f   : > { %986 = vmatpush3.bf16.msra.mxu1 %v983_v48 }
  0x50   : > { %966 = vmatpush3.bf16.msra.mxu0 %v963_v18  ;;  %988 = vmatprep.subr.bf16.mxu1 %v987_v51 }
  0x51   : > { %968 = vmatprep.subr.bf16.mxu0 %v967_v21 }
  0x53   : > { %990 = vmatpush3.bf16.msra.mxu1 %v987_v51 }
  0x54   : > { %970 = vmatpush3.bf16.msra.mxu0 %v967_v21 }
  0x55   : > { %972 = vmatprep.subr.bf16.mxu0 %v971_v24 }
  0x58   : > { %974 = vmatpush3.bf16.msra.mxu0 %v971_v24 }
  0x5b   : > { %880 = vmatmul.mubr.f32.vlgmr.msra.gmra.mrb[0].mxu0 %v246_v25 }
  0x5c   : > { %882 = vmatprep.mubr.f32.mxu0 %v247_v26 }
  0x5f   : > { %883 = vmatmul.mubr.f32.gmra.mrb[2].mxu0 %v248_v27 }
  0x60   : > { %885 = vmatprep.mubr.f32.mxu0 %v249_v28 }
  0x63   : > { %886 = vmatmul.mubr.f32.gmra.mrb[4].mxu0 %v250_v29 }
  0x64   : > { %888 = vmatprep.mubr.f32.mxu0 %v251_v30 }
  0x67   : > { %889 = vmatmul.mubr.f32.gmra.mrb[6].mxu0 %v252_v31 }
  0x68   : > { %891 = vmatprep.mubr.f32.mxu0 %v253_v32 }
  0x6b   : > { %892 = vmatmul.mubr.f32.gmra.mrb[8].mxu0 %v254_v33 }
  0x6c   : > { %894 = vmatprep.mubr.f32.mxu0 %v255_v34 }
  0x6f   : > { %895 = vmatmul.mubr.f32.gmra.mrb[10].mxu0 %v256_v35 }
  0x70   : > { %897 = vmatprep.mubr.f32.mxu0 %v257_v36 }
  0x73   : > { %898 = vmatmul.mubr.f32.gmra.mrb[12].mxu0 %v258_v37  ;;  %v767_v37 = vld [vmem:[%s1526_s4] ss:$0 sm:$0xff] }
  0x74   : > { %900 = vmatprep.mubr.f32.mxu0 %v259_v38 }
  0x77   : > { %901 = vmatmul.mubr.f32.gmra.mrb[14].mxu0 %v260_v39 }
 0x12e   : > { %v881_v53 = vpop.f32.mrb[0].mxu0 }
 0x12f   : > { %v356_v54 = vadd.f32 %v881_v53, %v1414_v52  ;;  %v350_v55 = vpop.f32.mrb[1].mxu0 }
 0x130   : > { %v351_v56 = vadd.f32 %v1414_v52, %v350_v55 }
 0x132   : > { %1041 = vtanh.f32 %v351_v56  ;;  %v884_v57 = vpop.f32.mrb[2].mxu0 }
 0x133   : > { %1043 = vtanh.f32 %v356_v54  ;;  %v366_v58 = vadd.f32 %v884_v57, %v1414_v52  ;;  %v360_v59 = vpop.f32.mrb[3].mxu0 }
 0x134   : > { %v361_v60 = vadd.f32 %v1414_v52, %v360_v59 }
 0x136   : > { %1045 = vtanh.f32 %v361_v60  ;;  %v887_v61 = vpop.f32.mrb[4].mxu0 }
 0x137   : > { %1047 = vtanh.f32 %v366_v58  ;;  %v376_v62 = vadd.f32 %v887_v61, %v1414_v52  ;;  %v370_v63 = vpop.f32.mrb[5].mxu0 }
 0x138   : > { %v371_v0 = vadd.f32 %v1414_v52, %v370_v63 }
 0x13a   : > { %1049 = vtanh.f32 %v371_v0  ;;  %v890_v1 = vpop.f32.mrb[6].mxu0 }
 0x13b   : > { %1051 = vtanh.f32 %v376_v62  ;;  %v386_v2 = vadd.f32 %v890_v1, %v1414_v52  ;;  %v380_v3 = vpop.f32.mrb[7].mxu0 }
 0x13c   : > { %v1042_v4 = vpop.eup %1041  ;;  %v381_v5 = vadd.f32 %v1414_v52, %v380_v3 }
 0x13d   : > { %v1044_v6 = vpop.eup %1043  ;;  %919 = vmatprep.mubr.msk.f32.mxu1 %vm460_vm0, %v1042_v4 }
 0x13e   : > { %1053 = vtanh.f32 %v381_v5  ;;  %v893_v7 = vpop.f32.mrb[8].mxu0  ;;  %920 = vmatmul.mubr.msk.f32.vlgmr.msra.gmra.mrb[0].mxu1 %vm460_vm0, %v1044_v6 }
 0x13f   : > { %1055 = vtanh.f32 %v386_v2  ;;  %v396_v8 = vadd.f32 %v893_v7, %v1414_v52  ;;  %v390_v9 = vpop.f32.mrb[9].mxu0 }
 0x140   : > { %v1046_v10 = vpop.eup %1045  ;;  %v391_v11 = vadd.f32 %v1414_v52, %v390_v9 }
 0x141   : > { %v1048_v12 = vpop.eup %1047  ;;  %922 = vmatprep.mubr.msk.f32.mxu1 %vm460_vm0, %v1046_v10 }
 0x142   : > { %1057 = vtanh.f32 %v391_v11  ;;  %v896_v13 = vpop.f32.mrb[10].mxu0  ;;  %923 = vmatmul.mubr.msk.f32.gmra.mrb[2].mxu1 %vm460_vm0, %v1048_v12 }
 0x143   : > { %1059 = vtanh.f32 %v396_v8  ;;  %v406_v14 = vadd.f32 %v896_v13, %v1414_v52  ;;  %v400_v15 = vpop.f32.mrb[11].mxu0 }
 0x144   : > { %v1050_v16 = vpop.eup %1049  ;;  %v401_v17 = vadd.f32 %v1414_v52, %v400_v15 }
 0x145   : > { %v1052_v18 = vpop.eup %1051  ;;  %925 = vmatprep.mubr.msk.f32.mxu1 %vm460_vm0, %v1050_v16 }
 0x146   : > { %1061 = vtanh.f32 %v401_v17  ;;  %v899_v19 = vpop.f32.mrb[12].mxu0  ;;  %926 = vmatmul.mubr.msk.f32.gmra.mrb[4].mxu1 %vm460_vm0, %v1052_v18 }
 0x147   : > { %1063 = vtanh.f32 %v406_v14  ;;  %v416_v20 = vadd.f32 %v899_v19, %v1414_v52  ;;  %v410_v21 = vpop.f32.mrb[13].mxu0 }
 0x148   : > { %v1054_v22 = vpop.eup %1053  ;;  %v411_v23 = vadd.f32 %v1414_v52, %v410_v21 }
 0x149   : > { %v1056_v24 = vpop.eup %1055  ;;  %928 = vmatprep.mubr.msk.f32.mxu1 %vm460_vm0, %v1054_v22 }
 0x14a   : > { %1065 = vtanh.f32 %v411_v23  ;;  %v902_v25 = vpop.f32.mrb[14].mxu0  ;;  %929 = vmatmul.mubr.msk.f32.gmra.mrb[6].mxu1 %vm460_vm0, %v1056_v24 }
 0x14b   : > { %1067 = vtanh.f32 %v416_v20  ;;  %v426_v26 = vadd.f32 %v902_v25, %v1414_v52  ;;  %v420_v27 = vpop.f32.mrb[15].mxu0 }
 0x14c   : > { %v1058_v28 = vpop.eup %1057  ;;  %v421_v29 = vadd.f32 %v1414_v52, %v420_v27 }
 0x14d   : > { %v1060_v30 = vpop.eup %1059  ;;  %931 = vmatprep.mubr.msk.f32.mxu1 %vm460_vm0, %v1058_v28 }
 0x14e   : > { %1069 = vtanh.f32 %v421_v29  ;;  %932 = vmatmul.mubr.msk.f32.gmra.mrb[8].mxu1 %vm460_vm0, %v1060_v30 }
 0x14f   : > { %1071 = vtanh.f32 %v426_v26 }
 0x150   : > { %v1062_v31 = vpop.eup %1061 }
 0x151   : > { %v1064_v32 = vpop.eup %1063  ;;  %934 = vmatprep.mubr.msk.f32.mxu1 %vm460_vm0, %v1062_v31 }
 0x152   : > { %935 = vmatmul.mubr.msk.f32.gmra.mrb[10].mxu1 %vm460_vm0, %v1064_v32 }
 0x154   : > { %v1066_v33 = vpop.eup %1065 }
 0x155   : > { %v1068_v34 = vpop.eup %1067  ;;  %937 = vmatprep.mubr.msk.f32.mxu1 %vm460_vm0, %v1066_v33 }
 0x156   : > { %938 = vmatmul.mubr.msk.f32.gmra.mrb[12].mxu1 %vm460_vm0, %v1068_v34 }
 0x158   : > { %v1070_v35 = vpop.eup %1069 }
 0x159   : > { %v1072_v36 = vpop.eup %1071  ;;  %940 = vmatprep.mubr.msk.f32.mxu1 %vm460_vm0, %v1070_v35 }
 0x15a   : > { %941 = vmatmul.mubr.msk.f32.gmra.mrb[14].mxu1 %vm460_vm0, %v1072_v36 }
 0x211   : > { %v921_v38 = vpop.f32.mrb[0].mxu1 }
 0x212   : > { %v581_v39 = vadd.f32 %v921_v38, %v767_v37  ;;  %v575_v40 = vpop.f32.mrb[1].mxu1 }
 0x213   : > { %v576_v41 = vadd.f32 %v767_v37, %v575_v40 }
 0x214   : > { %655 = vst [vmem:[%s1453_s26 + $0x8] sm:$0xff] %v581_v39 }
 0x215   : > { %654 = vst [vmem:[%s1453_s26] sm:$0xff] %v576_v41  ;;  %v924_v42 = vpop.f32.mrb[2].mxu1 }
 0x216   : > { %v591_v43 = vadd.f32 %v924_v42, %v767_v37  ;;  %v585_v44 = vpop.f32.mrb[3].mxu1 }
 0x217   : > { %v586_v45 = vadd.f32 %v767_v37, %v585_v44 }
 0x218   : > { %657 = vst [vmem:[%s1453_s26 + $0x18] sm:$0xff] %v591_v43 }
 0x219   : > { %656 = vst [vmem:[%s1453_s26 + $0x10] sm:$0xff] %v586_v45  ;;  %v927_v46 = vpop.f32.mrb[4].mxu1 }
 0x21a   : > { %v601_v47 = vadd.f32 %v927_v46, %v767_v37  ;;  %v595_v48 = vpop.f32.mrb[5].mxu1 }
 0x21b   : > { %v596_v49 = vadd.f32 %v767_v37, %v595_v48 }
 0x21c   : > { %659 = vst [vmem:[%s1453_s26 + $0x28] sm:$0xff] %v601_v47 }
 0x21d   : > { %658 = vst [vmem:[%s1453_s26 + $0x20] sm:$0xff] %v596_v49  ;;  %v930_v50 = vpop.f32.mrb[6].mxu1 }
 0x21e   : > { %v611_v51 = vadd.f32 %v930_v50, %v767_v37  ;;  %v605_v52 = vpop.f32.mrb[7].mxu1 }
 0x21f   : > { %v606_v53 = vadd.f32 %v767_v37, %v605_v52 }
 0x220   : > { %661 = vst [vmem:[%s1453_s26 + $0x38] sm:$0xff] %v611_v51 }
 0x221   : > { %660 = vst [vmem:[%s1453_s26 + $0x30] sm:$0xff] %v606_v53  ;;  %v933_v54 = vpop.f32.mrb[8].mxu1 }
 0x222   : > { %v621_v55 = vadd.f32 %v933_v54, %v767_v37  ;;  %v615_v56 = vpop.f32.mrb[9].mxu1 }
 0x223   : > { %v616_v57 = vadd.f32 %v767_v37, %v615_v56 }
 0x224   : > { %663 = vst [vmem:[%s1453_s26 + $0x48] sm:$0xff] %v621_v55 }
 0x225   : > { %662 = vst [vmem:[%s1453_s26 + $0x40] sm:$0xff] %v616_v57  ;;  %v936_v58 = vpop.f32.mrb[10].mxu1 }
 0x226   : > { %v631_v59 = vadd.f32 %v936_v58, %v767_v37  ;;  %v625_v60 = vpop.f32.mrb[11].mxu1 }
 0x227   : > { %v626_v61 = vadd.f32 %v767_v37, %v625_v60 }
 0x228   : > { %665 = vst [vmem:[%s1453_s26 + $0x58] sm:$0xff] %v631_v59 }
 0x229   : > { %664 = vst [vmem:[%s1453_s26 + $0x50] sm:$0xff] %v626_v61  ;;  %v939_v62 = vpop.f32.mrb[12].mxu1 }
 0x22a   : > { %v641_v63 = vadd.f32 %v939_v62, %v767_v37  ;;  %v635_v0 = vpop.f32.mrb[13].mxu1 }
 0x22b   : > { %v636_v1 = vadd.f32 %v767_v37, %v635_v0 }
 0x22c   : > { %667 = vst [vmem:[%s1453_s26 + $0x68] sm:$0xff] %v641_v63 }
 0x22d   : > { %666 = vst [vmem:[%s1453_s26 + $0x60] sm:$0xff] %v636_v1  ;;  %v942_v2 = vpop.f32.mrb[14].mxu1 }
 0x22e   : > { %v651_v3 = vadd.f32 %v942_v2, %v767_v37  ;;  %v645_v4 = vpop.f32.mrb[15].mxu1 }
 0x22f   : > { %v646_v5 = vadd.f32 %v767_v37, %v645_v4 }
 0x230   : > { %669 = vst [vmem:[%s1453_s26 + $0x78] sm:$0xff] %v651_v3 }
 0x231   : > { %668 = vst [vmem:[%s1453_s26 + $0x70] sm:$0xff] %v646_v5 }
 0x232   : > { %1116 = shalt.err (!%p1113_p2)
}
 0x233   : > { %s1117_s10 = scalar_lea.hbm %s1474_s15, 2048  ;;  %s1121_s13 = scalar_lea.hbm %s1527_s5, 4096 }
 0x234   : > { %p1118_p4 = scmp.ne.s32.totalorder %s1474_s15, %s1117_s10  ;;  %p1122_p9 = scmp.lt.u32.totalorder %s1474_s15, %s1527_s5 }
 0x235   : > { %p1123_p1 = scmp.lt.u32.totalorder %s1121_s13, %s1117_s10  ;;  %p1125_p6 = scmp.lt.u32.totalorder %s1117_s10, %s1474_s15 }
 0x236   : > { %p1119_p5 = pnand %p1118_p4, %p1534_p11 }
 0x237   : > { %p1124_p3 = por %p1123_p1, %p1122_p9 }
 0x238   : > { %p1120_p7 = pneg %p1119_p5 }
 0x239   : > { %p1126_p12 = por %p1125_p6, %p1124_p3 }
 0x23b   : > { %p1127_p13 = pnand %p1126_p12, %p1120_p7 }
 0x23d   : > { %1130 = shalt.err (!%p1127_p13)
}
 0x23e   : > { %s1175_s25 = smov 128   ;;  %s1176_s28 = smov 8  }
 0x23f   : > { %993 = dma.vmem_to_hbm [thread:$0]  (%p1534_p11), %s1476_s12, 2048, %s1474_s15, %s671_s22, %s1175_s25, %s1175_s25, %s1176_s28  }
 0x240 PF: > { %s699_s14 = sand.u32 1, %s1157_s18   ;;  %p1535_p8 = scmp.ne.s32.totalorder %s1532_s6, 0 }
 0x241   : > { %p1536_p10 = scmp.ge.s32.totalorder %s1169_s21, 2  ;;  %s700_s16 = scalar_lea.sflag [#allocation4], %s699_s14 }
 0x243   : > { %p1000_p0 = pnand %p1536_p10, %p1535_p8 }
 0x245   : > { %1152 = dma.done.wait (!%p1000_p0), %s700_s16, 2048  }
 0x246   : > { %1154 = vsyncadd (!%p1000_p0), %s700_s16, 4294965248  ;;  %p18_p2 = scmp.ge.s32.totalorder %s1232_s24, 4   ;;  %s1537_s18 = smov %s1161_s19 }
 0x247   : > { %s1538_s19 = smov %s1165_s20  ;;  %s1539_s20 = smov %s1244_s27 }
 0x248   : > { %s1540_s21 = smov %s1232_s24  ;;  %20 = sbr.rel (!%p18_p2) target bundleno = 5 (0x5), region = 85 }
 0x24f   :  { %705 = vsyncpa [#allocation3], 1 }
 0x250   :  { %707 = vsyncpa [#allocation3 + $0x1], 1 }
 0x251   :  { %708 = vsyncpa [#allocation4], 1 }
 0x252   :  { %710 = vsyncpa [#allocation4 + $0x1], 1 }

</bundles_post_ra>
